<compile_context>
chip_gen: v7x
topology: tpu7x:2x2x1
jax: 0.10.0
libtpu: 0.0.40
codegen_flags: <defaults>
</compile_context>

<pallas_src>
import functools

import jax
import jax.numpy as jnp
from jax import lax
from jax.experimental import pallas as pl
from jax.experimental.pallas import tpu as pltpu


def _focal_kernel(x_ref, t_ref, a_ref, out_ref, *, gamma, rem):
    s = pl.program_id(1)

    x = x_ref[...].astype(jnp.float32)          # (C, TN)  logits, class on sublanes
    t = t_ref[...]                              # (1, TN)  int32 targets
    a = a_ref[...].astype(jnp.float32)          # (C, 1)   per-class alpha

    # Stable softmax pieces; class axis = sublanes = axis 0.
    m = jnp.max(x, axis=0, keepdims=True)                    # (1, TN)
    e = jnp.exp(x - m)                                       # (C, TN)  only big EUP op
    sum_e = jnp.sum(e, axis=0, keepdims=True)                # (1, TN)

    # One-hot gather of the target class along the sublane axis.
    cls = lax.broadcasted_iota(jnp.int32, x.shape, 0)        # (C, TN)
    onehot = (cls == t).astype(jnp.float32)                  # (C, TN)
    logit_t = jnp.sum(x * onehot, axis=0, keepdims=True)     # (1, TN)
    e_t = jnp.sum(e * onehot, axis=0, keepdims=True)         # (1, TN)
    alpha_t = jnp.sum(a * onehot, axis=0, keepdims=True)     # (1, TN)

    # Cross-entropy and pt.  pt reuses exp(x - m): no second exp per element.
    # ce stays stable even when the target class underflows (uses logits, not e_t).
    ce = jnp.maximum((m + jnp.log(sum_e)) - logit_t, 0.0)    # clamp fp rounding; CE >= 0
    pt = e_t / sum_e                                         # == exp(-ce), in [0, 1]

    base = jnp.maximum(1.0 - pt, 0.0)
    g = float(gamma)
    if g.is_integer() and 0 <= int(g) <= 8:
        gi = int(g)
        w = jnp.ones_like(base) if gi == 0 else base         # gamma=2 -> base*base
        for _ in range(max(gi - 1, 0)):
            w = w * base
    else:
        w = jnp.power(base, jnp.float32(g))                  # base >= 0, no NaN

    focal = alpha_t * w * ce                                 # (1, TN)

    @pl.when(s == 0)
    def _():
        out_ref[...] = jnp.zeros_like(out_ref)

    if rem:  # statically ragged last spatial tile: mask only that step
        last = pl.num_programs(1) - 1

        @pl.when(s != last)
        def _():
            out_ref[...] += jnp.sum(focal, axis=-1, keepdims=True)

        @pl.when(s == last)
        def _():
            cols = lax.broadcasted_iota(jnp.int32, focal.shape, 1)
            out_ref[...] += jnp.sum(jnp.where(cols < rem, focal, 0.0),
                                    axis=-1, keepdims=True)
    else:
        out_ref[...] += jnp.sum(focal, axis=-1, keepdims=True)


def _choose_tn(hw, c):
    """Spatial tile width: lane-dense and as wide as a ~2 MiB logits budget allows."""
    budget_elems = (2 * 1024 * 1024) // 4          # ~2 MiB of f32 logits per block
    tn = budget_elems // max(c, 1)
    tn = max(128, min(32 * 1024, tn))
    tn = (tn // 128) * 128
    if hw <= tn:
        return hw                                   # single full-extent tile
    return tn


def focal_loss(logits, targets, alpha=None, gamma=2.0, tn=None):
    """Mean focal loss matching PyTorch FocalLoss(alpha, gamma, 'mean').

    logits:  (B, C, *spatial)   targets: (B, *spatial) integer class ids.
    """
    B, C = int(logits.shape[0]), int(logits.shape[1])
    HW = 1
    for d in logits.shape[2:]:
        HW *= int(d)

    # Free reshapes of contiguous NCHW-style data -- no transpose, no pad.
    x = logits.reshape(B, C, HW).astype(jnp.float32)
    t = targets.reshape(B, 1, HW).astype(jnp.int32)

    if alpha is None:
        alpha_vec = jnp.ones((C,), jnp.float32)
    else:
        a = jnp.asarray(alpha, jnp.float32)
        alpha_vec = jnp.full((C,), a, jnp.float32) if a.ndim == 0 else a.reshape(C)
    alpha2d = alpha_vec.reshape(C, 1).astype(jnp.float32)

    if tn is None:
        tn = _choose_tn(HW, C)
    tn = min(int(tn), HW)
    if tn < HW:                                    # tiled: must be lane-aligned
        tn = max(128, (tn // 128) * 128)
    ns = pl.cdiv(HW, tn)
    rem = HW % tn                                   # 0 => exact tiling, no mask

    kernel = functools.partial(_focal_kernel, gamma=gamma, rem=rem)

    # VMEM budget: double-buffered inputs + headroom (safe on v5e/v6e/v7x).
    block_bytes = 4 * (C * tn + tn + C + 1)
    vmem_limit = int(min(64 * 1024 * 1024, max(16 * 1024 * 1024, 6 * block_bytes)))

    n_elems = B * HW
    cost = pl.CostEstimate(
        flops=int(n_elems * (8 * C + 16)),
        transcendentals=int(n_elems * (C + 2)),
        bytes_accessed=int(n_elems * C * 4 + n_elems * 4 + B * 4),
    )

    partials = pl.pallas_call(
        kernel,
        out_shape=jax.ShapeDtypeStruct((B, 1, 1), jnp.float32),
        grid_spec=pltpu.PrefetchScalarGridSpec(
            num_scalar_prefetch=0,
            grid=(B, ns),
            in_specs=[
                pl.BlockSpec((None, C, tn), lambda b, s: (b, 0, s)),   # logits
                pl.BlockSpec((None, 1, tn), lambda b, s: (b, 0, s)),   # targets
                pl.BlockSpec((C, 1), lambda b, s: (0, 0)),             # alpha
            ],
            out_specs=pl.BlockSpec((None, 1, 1), lambda b, s: (b, 0, 0)),
        ),
        compiler_params=pltpu.CompilerParams(
            dimension_semantics=("parallel", "arbitrary"),
            vmem_limit_bytes=vmem_limit,
        ),
        cost_estimate=cost,
    )(x, t, alpha2d)

    # TODO(synk): only reduction='mean' (the common path) is implemented;
    # 'sum'/'none' would return jnp.sum(partials) / per-element values instead.
    return jnp.sum(partials) / jnp.float32(B * HW)


def _focal_loss_ref(logits_nchw, targets, alpha=None, gamma=2.0):
    """Pure-JAX reference mirroring torch semantics (sanity check)."""
    B, C = logits_nchw.shape[0], logits_nchw.shape[1]
    x = jnp.moveaxis(logits_nchw, 1, -1).reshape(-1, C).astype(jnp.float32)
    t = targets.reshape(-1).astype(jnp.int32)
    logz = jax.scipy.special.logsumexp(x, axis=-1)
    ce = logz - jnp.take_along_axis(x, t[:, None], axis=-1)[:, 0]
    pt = jnp.exp(-ce)
    focal = (1.0 - pt) ** gamma * ce
    if alpha is not None:
        a = jnp.asarray(alpha, jnp.float32)
        focal = (a[t] if a.ndim > 0 else a) * focal
    return jnp.mean(focal)


if __name__ == "__main__":
    key = jax.random.PRNGKey(0)
    k1, k2 = jax.random.split(key)

    B, C, H, W = 2, 4, 16, 16
    logits = jax.random.normal(k1, (B, C, H, W), dtype=jnp.float32)
    targets = jax.random.randint(k2, (B, H, W), 0, C, dtype=jnp.int32)
    alpha = jnp.array([0.25, 0.5, 0.75, 1.0], dtype=jnp.float32)  # per-class weights
    gamma = 2.0

    loss = focal_loss(logits, targets, alpha, gamma=gamma)
    loss = jax.block_until_ready(loss)

    ref = _focal_loss_ref(logits, targets, alpha, gamma=gamma)
    assert jnp.allclose(loss, ref, rtol=2e-5, atol=1e-6), (loss, ref)

    print("KERNEL_OK")
</pallas_src>

<mosaic_0001>
module attributes {stable_mosaic.version = 11 : i64} {
  func.func @_focal_kernel(%arg0: i32, %arg1: i32, %arg2: memref<1x4x256xf32, #tpu.memory_space<vmem>>, %arg3: memref<1x1x256xi32, #tpu.memory_space<vmem>>, %arg4: memref<4x1xf32, #tpu.memory_space<vmem>>, %arg5: memref<1x1x1xf32, #tpu.memory_space<vmem>>) attributes {dimension_semantics = [#tpu.dimension_semantics<parallel>, #tpu.dimension_semantics<arbitrary>], iteration_bounds = array<i64: 2, 1>, scalar_prefetch = 0 : i64, scratch_operands = 0 : i64, tpu.core_type = #tpu.core_type<tc>, window_params = [{transform_indices = @transform_0, window_bounds = array<i64: 1, 4, 256>}, {transform_indices = @transform_1, window_bounds = array<i64: 1, 1, 256>}, {pipeline_mode = #tpu.pipeline_mode<synchronous>, transform_indices = @transform_2, window_bounds = array<i64: 4, 1>}, {transform_indices = @transform_3, window_bounds = array<i64: 1, 1, 1>}]} {
    %c0 = arith.constant 0 : index
    %c0_0 = arith.constant 0 : index
    %c0_1 = arith.constant 0 : index
    %0 = vector.load %arg2[%c0, %c0_0, %c0_1] : memref<1x4x256xf32, #tpu.memory_space<vmem>>, vector<1x4x256xf32>
    %1 = vector.shape_cast %0 : vector<1x4x256xf32> to vector<4x256xf32>
    %c0_2 = arith.constant 0 : index
    %c0_3 = arith.constant 0 : index
    %c0_4 = arith.constant 0 : index
    %2 = vector.load %arg3[%c0_2, %c0_3, %c0_4] : memref<1x1x256xi32, #tpu.memory_space<vmem>>, vector<1x1x256xi32>
    %3 = vector.shape_cast %2 : vector<1x1x256xi32> to vector<1x256xi32>
    %c0_5 = arith.constant 0 : index
    %c0_6 = arith.constant 0 : index
    %4 = vector.load %arg4[%c0_5, %c0_6] : memref<4x1xf32, #tpu.memory_space<vmem>>, vector<4x1xf32>
    %cst = arith.constant dense<0xFF800000> : vector<256xf32>
    %5 = vector.multi_reduction <maximumf>, %1, %cst [0] : vector<4x256xf32> to vector<256xf32>
    %6 = vector.shape_cast %5 : vector<256xf32> to vector<1x256xf32>
    %7 = vector.broadcast %6 : vector<1x256xf32> to vector<4x256xf32>
    %8 = arith.subf %1, %7 : vector<4x256xf32>
    %9 = math.exp %8 : vector<4x256xf32>
    %cst_7 = arith.constant dense<0.000000e+00> : vector<256xf32>
    %10 = vector.multi_reduction <add>, %9, %cst_7 [0] : vector<4x256xf32> to vector<256xf32>
    %11 = vector.shape_cast %10 : vector<256xf32> to vector<1x256xf32>
    %12 = tpu.iota {dimensions = array<i32: 0>} : vector<4x256xi32>
    %13 = vector.broadcast %3 : vector<1x256xi32> to vector<4x256xi32>
    %14 = arith.cmpi eq, %12, %13 : vector<4x256xi32>
    %15 = arith.extui %14 : vector<4x256xi1> to vector<4x256xi32>
    %16 = arith.sitofp %15 : vector<4x256xi32> to vector<4x256xf32>
    %17 = arith.mulf %1, %16 : vector<4x256xf32>
    %cst_8 = arith.constant dense<0.000000e+00> : vector<256xf32>
    %18 = vector.multi_reduction <add>, %17, %cst_8 [0] : vector<4x256xf32> to vector<256xf32>
    %19 = vector.shape_cast %18 : vector<256xf32> to vector<1x256xf32>
    %20 = arith.mulf %9, %16 : vector<4x256xf32>
    %cst_9 = arith.constant dense<0.000000e+00> : vector<256xf32>
    %21 = vector.multi_reduction <add>, %20, %cst_9 [0] : vector<4x256xf32> to vector<256xf32>
    %22 = vector.shape_cast %21 : vector<256xf32> to vector<1x256xf32>
    %23 = vector.broadcast %4 : vector<4x1xf32> to vector<4x256xf32>
    %24 = arith.mulf %23, %16 : vector<4x256xf32>
    %cst_10 = arith.constant dense<0.000000e+00> : vector<256xf32>
    %25 = vector.multi_reduction <add>, %24, %cst_10 [0] : vector<4x256xf32> to vector<256xf32>
    %26 = vector.shape_cast %25 : vector<256xf32> to vector<1x256xf32>
    %27 = math.log %11 : vector<1x256xf32>
    %28 = arith.addf %6, %27 : vector<1x256xf32>
    %29 = arith.subf %28, %19 : vector<1x256xf32>
    %cst_11 = arith.constant 0.000000e+00 : f32
    %30 = vector.broadcast %cst_11 : f32 to vector<1x256xf32>
    %31 = arith.maximumf %29, %30 : vector<1x256xf32>
    %32 = arith.divf %22, %11 : vector<1x256xf32>
    %cst_12 = arith.constant 1.000000e+00 : f32
    %33 = vector.broadcast %cst_12 : f32 to vector<1x256xf32>
    %34 = arith.subf %33, %32 : vector<1x256xf32>
    %cst_13 = arith.constant 0.000000e+00 : f32
    %35 = vector.broadcast %cst_13 : f32 to vector<1x256xf32>
    %36 = arith.maximumf %34, %35 : vector<1x256xf32>
    %37 = arith.mulf %36, %36 : vector<1x256xf32>
    %38 = arith.mulf %26, %37 : vector<1x256xf32>
    %39 = arith.mulf %38, %31 : vector<1x256xf32>
    %c0_i32 = arith.constant 0 : i32
    %40 = arith.cmpi eq, %arg1, %c0_i32 : i32
    %41 = arith.extui %40 : i1 to i32
    %c0_i32_14 = arith.constant 0 : i32
    %42 = arith.cmpi ne, %41, %c0_i32_14 : i32
    scf.if %42 {
      %cst_22 = arith.constant 0.000000e+00 : f32
      %51 = vector.broadcast %cst_22 : f32 to vector<1x1xf32>
      %c0_23 = arith.constant 0 : index
      %c0_24 = arith.constant 0 : index
      %c0_25 = arith.constant 0 : index
      %52 = vector.load %arg5[%c0_23, %c0_24, %c0_25] : memref<1x1x1xf32, #tpu.memory_space<vmem>>, vector<1x1x1xf32>
      %53 = vector.shape_cast %52 : vector<1x1x1xf32> to vector<1x1xf32>
      %54 = vector.shape_cast %51 : vector<1x1xf32> to vector<1x1x1xf32>
      tpu.vector_store %arg5[%c0_23, %c0_24, %c0_25], %54 {strides = array<i32>} : memref<1x1x1xf32, #tpu.memory_space<vmem>>, vector<1x1x1xf32>,
    } else {
    }
    %c0_15 = arith.constant 0 : index
    %c0_16 = arith.constant 0 : index
    %c0_17 = arith.constant 0 : index
    %43 = vector.load %arg5[%c0_15, %c0_16, %c0_17] : memref<1x1x1xf32, #tpu.memory_space<vmem>>, vector<1x1x1xf32>
    %44 = vector.shape_cast %43 : vector<1x1x1xf32> to vector<1x1xf32>
    %cst_18 = arith.constant dense<0.000000e+00> : vector<1xf32>
    %45 = vector.multi_reduction <add>, %39, %cst_18 [1] : vector<1x256xf32> to vector<1xf32>
    %46 = vector.shape_cast %45 : vector<1xf32> to vector<1x1xf32>
    %47 = arith.addf %44, %46 : vector<1x1xf32>
    %c0_19 = arith.constant 0 : index
    %c0_20 = arith.constant 0 : index
    %c0_21 = arith.constant 0 : index
    %48 = vector.load %arg5[%c0_19, %c0_20, %c0_21] : memref<1x1x1xf32, #tpu.memory_space<vmem>>, vector<1x1x1xf32>
    %49 = vector.shape_cast %48 : vector<1x1x1xf32> to vector<1x1xf32>
    %50 = vector.shape_cast %47 : vector<1x1xf32> to vector<1x1x1xf32>
    tpu.vector_store %arg5[%c0_19, %c0_20, %c0_21], %50 {strides = array<i32>} : memref<1x1x1xf32, #tpu.memory_space<vmem>>, vector<1x1x1xf32>,
    return
  }
  func.func @transform_0(%arg0: i32, %arg1: i32) -> (i32, i32, i32) {
    %c0_i32 = arith.constant 0 : i32
    %c0_i32_0 = arith.constant 0 : i32
    return %arg0, %c0_i32, %arg1 : i32, i32, i32
  }
  func.func @transform_1(%arg0: i32, %arg1: i32) -> (i32, i32, i32) {
    %c0_i32 = arith.constant 0 : i32
    %c0_i32_0 = arith.constant 0 : i32
    return %arg0, %c0_i32, %arg1 : i32, i32, i32
  }
  func.func @transform_2(%arg0: i32, %arg1: i32) -> (i32, i32) {
    %c0_i32 = arith.constant 0 : i32
    %c0_i32_0 = arith.constant 0 : i32
    %c0_i32_1 = arith.constant 0 : i32
    return %c0_i32, %c0_i32_0 : i32, i32
  }
  func.func @transform_3(%arg0: i32, %arg1: i32) -> (i32, i32, i32) {
    %c0_i32 = arith.constant 0 : i32
    %c0_i32_0 = arith.constant 0 : i32
    %c0_i32_1 = arith.constant 0 : i32
    return %arg0, %c0_i32, %c0_i32_0 : i32, i32, i32
  }
}

</mosaic_0001>

<bundles_post_ra>
// kernel: tpu_custom_call.1
= control target key start
LH: loop header
LB: loop body
LE: loop exit
PB: predicated region body
PF: predicated region fallthrough
CT: control target
= control target key end

     0   :  { %8 = vsyncpa [#allocation3], 0  ;;  %s835_s0 = inlined_call_operand.hbm [shape: f32[2,4,256], index: 0, kind: input, shape index: {}]   ;;  %s836_s1 = inlined_call_operand.vmem [shape: s32[2,1,256], index: 1, kind: input, shape index: {}]   ;;  %s837_s2 = inlined_call_operand.vmem [shape: f32[4,1], index: 2, kind: input, shape index: {}]   ;;  %s838_s3 = inlined_call_operand.vmem [shape: f32[2,1,1], index: 3, kind: output, shape index: {}]  }
   0x1   :  { %10 = vsyncpa [#allocation3 + $0x1], 0  ;;  %s668_s12 = smov 0   ;;  %s670_s13 = smov 0  }
   0x2   :  { %s672_s14 = smov 0   ;;  %s674_s15 = smov 0  }
   0x3   :  { %s676_s16 = smov 0   ;;  %s678_s17 = smov 0  }
   0x4 LB: > { %s479_s18 = sadd.s32 4294967295, %s643_s17   ;;  %s28_s19 = sadd.s32 1, %s639_s16  ;;  %s643_s17 = sphi %s678_s17, %s16_s17   ;;  %s639_s16 = sphi %s676_s16, %s848_s16   ;;  %s635_s15 = sphi %s674_s15, %s847_s15   ;;  %s631_s14 = sphi %s672_s14, %s846_s14   ;;  %s627_s13 = sphi %s670_s13, %s845_s13   ;;  %s623_s12 = sphi %s668_s12, %s844_s12  }
   0x5   : > { %p30_p0 = scmp.ge.s32.totalorder %s28_s19, 2  ;;  %s37_s20 = sadd.s32 1, %s631_s14 }
   0x6   : > { %p44_p1 = scmp.ne.s32.totalorder %s631_s14, %s627_s13  ;;  %p45_p2 = scmp.eq.s32.totalorder %s643_s17, 0 }
   0x7   : > { %s850_s19 = smov (%p30_p0, %s28_s19), 0  ;;  %p50_p4 = scmp.ne.s32.totalorder %s627_s13, %s623_s12 }
   0x8   : > { %p704_p3 = por %p45_p2, %p44_p1  ;;  %s32_s22 = ssub.s32 %s639_s16, %s850_s19 }
   0x9   : > { %p51_p5 = scmp.eq.s32.totalorder %s479_s18, 0  ;;  %p35_p6 = scmp.eq.s32.totalorder %s32_s22, 0 }
   0xa   : > { %p500_p8 = scmp.lt.s32.totalorder %s643_s17, 2  ;;  %s152_s25 = sand.u32 1, %s631_s14  }
   0xb   : > { %p711_p7 = por %p51_p5, %p50_p4  ;;  %s493_s26 = sshll.u32 %s639_s16, 7 }
   0xc   : > { %s717_s24 = scalar_select %p35_p6, %s631_s14, %s37_s20  }
   0xd   : > { %s483_s27 = sshll.u32 %s152_s25, 3  ;;  %s724_s30 = scalar_lea.hbm %s835_s0, %s493_s26 }
   0xe   : > { %s156_s4 = scalar_lea.vmem [#allocation2], %s483_s27  ;;  %p728_p9 = pnand %p500_p8, %p704_p3 }
   0xf   : > { %s166_s5 = sshll.u32 %s156_s4, 4  ;;  %s153_s7 = scalar_lea.sflag [#allocation3], %s152_s25  ;;  %s732_s5 = int_to_ptr.vmem [resolvable:$true] %s166_s5 }
  0x10   : > { %s563_s8 = scalar_lea.hbm %s724_s30, 128  ;;  %p565_p13 = pneg %p728_p9 }
  0x11   : > { %p564_p12 = scmp.ne.s32.totalorder %s724_s30, %s563_s8  ;;  %s568_s11 = scalar_lea.hbm %s835_s0, 256 }
  0x12   : > { %p569_p2 = scmp.lt.u32.totalorder %s724_s30, %s835_s0  ;;  %p570_p3 = scmp.lt.u32.totalorder %s568_s11, %s563_s8 }
  0x13   : > { %p566_p0 = pnand %p565_p13, %p564_p12  ;;  %p572_p5 = scmp.lt.u32.totalorder %s563_s8, %s724_s30 }
  0x14   : > { %p571_p4 = por %p570_p3, %p569_p2 }
  0x15   : > { %p567_p1 = pneg %p566_p0 }
  0x16   : > { %p573_p6 = por %p572_p5, %p571_p4 }
  0x18   : > { %p574_p8 = pnand %p573_p6, %p567_p1 }
  0x1a   : > { %577 = shalt.err (!%p574_p8)
}
  0x1b   : > { %s578_s20 = scalar_lea.vmem %s732_s5, 128  ;;  %s645_s21 = smov [#allocation2]  }
  0x1c   : > { %p579_p12 = scmp.ne.s32.totalorder %s732_s5, %s578_s20  ;;  %s583_s22 = sshll.u32 %s645_s21, 4  ;;  %s584_s22 = int_to_ptr.vmem [resolvable:$false] %s583_s22 }
  0x1d   : > { %s585_s25 = scalar_lea.vmem %s584_s22, 256  ;;  %p586_p11 = scmp.lt.s32.totalorder %s732_s5, %s584_s22 }
  0x1e   : > { %p581_p0 = pnand %p579_p12, %p565_p13  ;;  %p587_p2 = scmp.lt.s32.totalorder %s585_s25, %s578_s20 }
  0x20   : > { %p582_p10 = pneg %p581_p0  ;;  %p588_p3 = por %p587_p2, %p586_p11 }
  0x22   : > { %p589_p4 = pnand %p588_p3, %p582_p10 }
  0x24   : > { %592 = shalt.err (!%p589_p4)
}
  0x25   : > { %499 = dma.hbm_to_vmem [thread:$0]  (!%p728_p9), %s724_s30, 128, %s732_s5, %s153_s7  }
  0x26   : > { %p842_p1 = scmp.lt.s32.totalorder %s643_s17, 3  ;;  %p843_p5 = scmp.ge.s32.totalorder %s643_s17, 1 }
  0x28   : > { %p184_p13 = pnand %p843_p5, %p842_p1 }
  0x29   : > { %s189_s26 = sand.u32 (!%p184_p13), 1, %s627_s13  }
  0x2a   : > { %187 = sbr.rel (%p184_p13) target bundleno = 346 (0x15a), region = 32  ;;  %s766_s27 = sshll.u32 (!%p184_p13), %s189_s26, 3 }
  0x2b   : > { %s190_s28 = scalar_lea.sflag (!%p184_p13), [#allocation3], %s189_s26  ;;  %s193_s29 = scalar_lea.vmem (!%p184_p13), [#allocation2], %s766_s27 }
  0x31   : > { %618 = dma.done.wait (%p711_p7), %s190_s28, 128  }
  0x32   : > { %620 = vsyncadd (%p711_p7), %s190_s28, 4294967168  ;;  %p224_p9 = scmp.lt.s32.totalorder %s635_s15, 1  ;;  %v280_v0 = vlaneseq  ;;  %v646_v1 = vmov 0   ;;  %v237_v5 = vld [vmem:[%s837_s2] sm:$0xf]  ;;  %v647_v9 = vmov 0.0  }
  0x33   : > { %551 = vset.pattern.permute.xlu0 %v646_v1  ;;  %vm385_vm2 = vcmask 0   ;;  %v235_v13 = vld [vmem:[%s193_s29] sm:$0xff]  ;;  %vm241_vm3 = vcmask 1043456  }
  0x34   : > { %s852_s15 = smov (!%p224_p9, %s635_s15), 1  ;;  %v281_v2 = vshrl.u32 %v280_v0, 7  ;;  %338 = vperm.xlu0 %551, %v237_v5   ;;  %v239_v14 = vcombine.high %v235_v13, %v235_v13  ;;  %v242_v15 = vsel %vm241_vm3, %v235_v13, -inf }
  0x35   : > { %s488_s30 = sshll.u32 %s852_s15, 1  ;;  %s790_s10 = scalar_lea.vmem %s838_s3, %s852_s15  ;;  %v243_v17 = vrot.slane %v242_v15, 4 }
  0x36   : > { %v284_v3 = vsub.s32 0, %v281_v2  ;;  %v288_v4 = vsub.s32 1, %v281_v2  ;;  %s230_s6 = scalar_lea.vmem %s836_s1, %s488_s30  ;;  %386 = vst.msk [vmem:[%s790_s10] sm:$0x1] %vm385_vm2, %v647_v9  ;;  %v249_v16 = vsel %vm241_vm3, %v239_v14, -inf }
  0x37   : > { %v236_v6 = vld [vmem:[%s230_s6] sm:$0x3]  ;;  %v250_v18 = vrot.slane %v249_v16, 4  ;;  %v244_v19 = vmax.f32 %v242_v15, %v243_v17 }
  0x38   : > { %v285_v7 = vrot.slane %v236_v6, %v284_v3  ;;  %v289_v8 = vrot.slane %v236_v6, %v288_v4 }
  0x39   : > { %v251_v20 = vmax.f32 %v249_v16, %v250_v18  ;;  %v245_v21 = vrot.slane %v244_v19, 2 }
  0x3a   : > { %vm290_vm0 = vcmp.eq.s32.totalorder %v281_v2, %v285_v7  ;;  %vm291_vm1 = vcmp.eq.s32.totalorder %v281_v2, %v289_v8 }
  0x3b   : > { %v781_v10 = vsel %vm290_vm0, 1.0, %v647_v9  ;;  %v783_v11 = vsel %vm291_vm1, 1.0, %v647_v9  ;;  %v252_v22 = vrot.slane %v251_v20, 2  ;;  %v246_v23 = vmax.f32 %v244_v19, %v245_v21 }
  0x3c   : > { %v298_v12 = vcombine.low %v781_v10, %v783_v11 }
  0x3d   : > { %v253_v24 = vmax.f32 %v251_v20, %v252_v22  ;;  %v247_v25 = vrot.slane %v246_v23, 1 }
  0x3e   : > { %v300_v46 = vmul.f32 %v298_v12, %v235_v13 }
  0x3f   : > { %v254_v26 = vrot.slane %v253_v24, 1  ;;  %v796_v27 = vmax.f32 %v246_v23, %v247_v25 }
  0x40   : > { %v302_v51 = vcombine.high %v300_v46, %v300_v46  ;;  %v304_v56 = vsel %vm241_vm3, %v300_v46, 0.0 }
  0x41   : > { %v798_v28 = vmax.f32 %v253_v24, %v254_v26  ;;  %v305_v62 = vrot.slane %v304_v56, 4 }
  0x42   : > { %v311_v57 = vsel %vm241_vm3, %v302_v51, 0.0 }
  0x43   : > { %v258_v29 = vcombine.low %v796_v27, %v798_v28  ;;  %v312_v63 = vrot.slane %v311_v57, 4  ;;  %v306_v2 = vadd.f32 %v305_v62, %v304_v56 }
  0x45   : > { %v260_v30 = vsub.f32 %v235_v13, %v258_v29  ;;  %v313_v3 = vadd.f32 %v312_v63, %v311_v57  ;;  %v307_v6 = vrot.slane %v306_v2, 2 }
  0x47   : > { %v261_v31 = vmul.f32 1.442695, %v260_v30  ;;  %v314_v7 = vrot.slane %v313_v3, 2  ;;  %v308_v14 = vadd.f32 %v307_v6, %v306_v2 }
  0x49   : > { %553 = vpow2.f32 %v261_v31  ;;  %v315_v15 = vadd.f32 %v314_v7, %v313_v3  ;;  %v309_v23 = vrot.slane %v308_v14, 1 }
  0x4b   : > { %v316_v24 = vrot.slane %v315_v15, 1 }
  0x53   : > { %v554_v32 = vpop.eup %553 }
  0x54   : > { %v264_v33 = vcombine.high %v554_v32, %v554_v32  ;;  %v266_v34 = vsel %vm241_vm3, %v554_v32, 0.0  ;;  %v318_v38 = vmul.f32 %v554_v32, %v298_v12 }
  0x55   : > { %v267_v36 = vrot.slane %v266_v34, 4 }
  0x56   : > { %v273_v35 = vsel %vm241_vm3, %v264_v33, 0.0  ;;  %v320_v41 = vcombine.high %v318_v38, %v318_v38  ;;  %v322_v44 = vsel %vm241_vm3, %v318_v38, 0.0 }
  0x57   : > { %v274_v37 = vrot.slane %v273_v35, 4  ;;  %v268_v39 = vadd.f32 %v267_v36, %v266_v34  ;;  %v323_v49 = vrot.slane %v322_v44, 4  ;;  %v317_v36 = vadd.f32 %v316_v24, %v315_v15 }
  0x58   : > { %v329_v45 = vsel %vm241_vm3, %v320_v41, 0.0 }
  0x59   : > { %v275_v40 = vadd.f32 %v274_v37, %v273_v35  ;;  %v269_v42 = vrot.slane %v268_v39, 2  ;;  %v330_v50 = vrot.slane %v329_v45, 4  ;;  %v324_v54 = vadd.f32 %v323_v49, %v322_v44 }
  0x5a   : > { %v310_v35 = vadd.f32 %v309_v23, %v308_v14 }
  0x5b   : > { %v276_v43 = vrot.slane %v275_v40, 2  ;;  %v270_v47 = vadd.f32 %v269_v42, %v268_v39  ;;  %v331_v55 = vadd.f32 %v330_v50, %v329_v45  ;;  %v325_v60 = vrot.slane %v324_v54, 2 }
  0x5d   : > { %v277_v48 = vadd.f32 %v276_v43, %v275_v40  ;;  %v271_v52 = vrot.slane %v270_v47, 1  ;;  %v332_v61 = vrot.slane %v331_v55, 2  ;;  %v326_v0 = vadd.f32 %v325_v60, %v324_v54 }
  0x5f   : > { %v278_v53 = vrot.slane %v277_v48, 1  ;;  %v272_v58 = vadd.f32 %v271_v52, %v270_v47  ;;  %v333_v1 = vadd.f32 %v332_v61, %v331_v55  ;;  %v327_v4 = vrot.slane %v326_v0, 1 }
  0x61   : > { %v279_v59 = vadd.f32 %v278_v53, %v277_v48  ;;  %555 = vrcp.f32 %v272_v58  ;;  %v334_v5 = vrot.slane %v333_v1, 1  ;;  %v328_v9 = vadd.f32 %v327_v4, %v326_v0 }
  0x63   : > { %557 = vrcp.f32 %v279_v59  ;;  %v335_v12 = vadd.f32 %v334_v5, %v333_v1 }
  0x64   : > { %559 = vlog2.f32 %v272_v58  ;;  %v387_v58 = vld [vmem:[%s790_s10] sm:$0x1] }
  0x65   : > { %561 = vlog2.f32 %v279_v59 }
  0x6b   : > { %v556_v8 = vpop.eup %555 }
  0x6c   : > { %v368_v19 = vmul.f32 %v556_v8, %v328_v9 }
  0x6d   : > { %v558_v13 = vpop.eup %557 }
  0x6e   : > { %v560_v16 = vpop.eup %559  ;;  %v370_v20 = vmul.f32 %v558_v13, %v335_v12  ;;  %v371_v33 = vsub.f32 1.0, %v368_v19 }
  0x6f   : > { %v562_v17 = vpop.eup %561  ;;  %v358_v25 = vmul.f32 0.6931472, %v560_v16 }
  0x70   : > { %v360_v26 = vmul.f32 0.6931472, %v562_v17  ;;  %v372_v34 = vsub.f32 1.0, %v370_v20  ;;  %v373_v41 = vmax.f32 %v371_v33, 0.0 }
  0x72   : > { %v374_v42 = vmax.f32 %v372_v34, 0.0  ;;  %v375_v49 = vmul.f32 %v373_v41, %v373_v41 }
  0x74   : > { %v376_v50 = vmul.f32 %v374_v42, %v374_v42 }
  0xb3   : > { %v339_v18 = vpop.permute.xlu0 %338 }
  0xb4   : > { %v341_v21 = vmul.f32 %v781_v10, %v339_v18  ;;  %v342_v22 = vmul.f32 %v783_v11, %v339_v18  ;;  %v361_v10 = vadd.f32 %v358_v25, %v796_v27  ;;  %v362_v11 = vadd.f32 %v360_v26, %v798_v28 }
  0xb6   : > { %v343_v29 = vsel %vm241_vm3, %v341_v21, 0.0  ;;  %v350_v30 = vsel %vm241_vm3, %v342_v22, 0.0  ;;  %v363_v45 = vsub.f32 %v361_v10, %v310_v35  ;;  %v364_v46 = vsub.f32 %v362_v11, %v317_v36 }
  0xb7   : > { %v344_v31 = vrot.slane %v343_v29, 4  ;;  %v351_v32 = vrot.slane %v350_v30, 4 }
  0xb8   : > { %v365_v53 = vmax.f32 %v363_v45, 0.0  ;;  %v366_v27 = vmax.f32 %v364_v46, 0.0 }
  0xb9   : > { %v345_v37 = vadd.f32 %v344_v31, %v343_v29  ;;  %v352_v38 = vadd.f32 %v351_v32, %v350_v30 }
  0xbb   : > { %v346_v39 = vrot.slane %v345_v37, 2  ;;  %v353_v40 = vrot.slane %v352_v38, 2 }
  0xbd   : > { %v347_v43 = vadd.f32 %v346_v39, %v345_v37  ;;  %v354_v44 = vadd.f32 %v353_v40, %v352_v38 }
  0xbf   : > { %v348_v47 = vrot.slane %v347_v43, 1  ;;  %v355_v48 = vrot.slane %v354_v44, 1 }
  0xc1   : > { %v349_v51 = vadd.f32 %v348_v47, %v347_v43  ;;  %v356_v52 = vadd.f32 %v355_v48, %v354_v44 }
  0xc3   : > { %v377_v54 = vmul.f32 %v375_v49, %v349_v51  ;;  %v378_v28 = vmul.f32 %v376_v50, %v356_v52 }
  0xc5   : > { %v379_v55 = vmul.f32 %v377_v54, %v365_v53  ;;  %v380_v56 = vmul.f32 %v378_v28, %v366_v27 }
  0xc7   : > { %v388_v57 = vadd.f32 %v380_v56, %v379_v55 }
  0xc9   : > { %389 = vadd.xlane.f32.xlu0 %v388_v57 }
 0x156   : > { %v390_v59 = vpop.xlane.xlu0 %389 }
 0x157   : > { %v391_v60 = vadd.f32 %v390_v59, %v387_v58 }
 0x159   : > { %393 = vst.msk [vmem:[%s790_s10] sm:$0x1] %vm385_vm2, %v391_v60 }
 0x15a PF: > { %s16_s17 = sadd.s32 1, %s643_s17   ;;  %s844_s12 = smov %s627_s13 }
 0x15b   : > { %p13_p7 = scmp.ge.s32.totalorder %s16_s17, 4   ;;  %s845_s13 = smov %s631_s14 }
 0x15c   : > { %s846_s14 = smov %s717_s24  ;;  %s847_s15 = smov %s639_s16 }
 0x15d   : > { %s848_s16 = smov %s850_s19  ;;  %15 = sbr.rel (!%p13_p7) target bundleno = 4 (0x4), region = 79 }
 0x164   :  { %411 = vsyncpa [#allocation3], 1 }
 0x165   :  { %413 = vsyncpa [#allocation3 + $0x1], 1 }

</bundles_post_ra>
